<compile_context>
chip_gen: v6e
topology: v6e:2x2x1
jax: 0.10.0
libtpu: 0.0.40
codegen_flags: <defaults>
</compile_context>

<pallas_src>
import jax
import jax.numpy as jnp
from jax.experimental import pallas as pl
from jax.experimental.pallas import tpu as pltpu


# Explicit scoped-VMEM budget: matches the v6e/v7x default (32 MiB) and raises
# the v5e default (16 MiB); tile targets below keep the working set well under it.
_VMEM_LIMIT_BYTES = 32 * 1024 * 1024
_ROW_TILE_TARGET = 256      # sublane-dim tile target (multiple of 8)
_LANE_TILE_TARGET = 2048    # lane-dim tile target (multiple of 128)


def _pick_tile(dim: int, align: int, target: int) -> int:
    """Largest divisor of `dim` that is a multiple of `align` and <= target.

    Falls back to the full dimension (always a legal Pallas block) when the
    dim is already small or no aligned divisor exists.
    """
    if dim <= target:
        return dim
    t = (target // align) * align
    while t >= align:
        if dim % t == 0:
            return t
        t -= align
    return dim


# ----------------------------------------------------------------------------
# Pass 1: pooled sums over HW.  x2: (R, HW) -> sums: (R, 1) f32.
# Output block is the accumulator (same block index across the HW grid axis).
# ----------------------------------------------------------------------------
def pool_sum_kernel(x_ref, o_ref):
    part = jnp.sum(x_ref[...].astype(jnp.float32), axis=-1, keepdims=True)

    @pl.when(pl.program_id(1) == 0)
    def _():
        o_ref[...] = jnp.zeros_like(o_ref)

    o_ref[...] += part


# ----------------------------------------------------------------------------
# Pass 2: gate MLP.  pooled (B, C) f32 -> sigmoid(relu(pooled @ W1) @ W2), f32.
# Batched over B (M = B on the MXU instead of M = 1 per grid step).
# ----------------------------------------------------------------------------
def se_gate_kernel(pooled_ref, w1_ref, w2_ref, gate_ref):
    p = pooled_ref[...]                                             # (B, C) f32
    h = jnp.dot(p, w1_ref[...].astype(jnp.float32),
                preferred_element_type=jnp.float32)                 # (B, C//r)
    h = jnp.maximum(h, 0.0)
    y = jnp.dot(h, w2_ref[...].astype(jnp.float32),
                preferred_element_type=jnp.float32)                 # (B, C)
    gate_ref[...] = jax.nn.sigmoid(y)


# ----------------------------------------------------------------------------
# Pass 3: broadcast-scale.  out = x * gate, native dtype, lane-dense output.
# ----------------------------------------------------------------------------
def scale_kernel(x_ref, g_ref, o_ref):
    # x_ref: (tr, tc); g_ref: (tr, 1) — broadcast over lanes; same dtype as x.
    o_ref[...] = x_ref[...] * g_ref[...]


def se_layer(x, w1, w2):
    """x: (B, C, H, W) NCHW.  w1: (C, C//r).  w2: (C//r, C).  Returns NCHW."""
    b, c, hh, ww = x.shape
    hw = hh * ww
    r = b * c
    x2 = x.reshape(r, hw)                          # rows -> sublanes, HW -> lanes

    tr = _pick_tile(r, 8, _ROW_TILE_TARGET)
    tc = _pick_tile(hw, 128, _LANE_TILE_TARGET)

    # --- Pass 1: pooled sums (Pallas tiled reduction) -----------------------
    sums = pl.pallas_call(
        pool_sum_kernel,
        out_shape=jax.ShapeDtypeStruct((r, 1), jnp.float32),
        grid_spec=pltpu.PrefetchScalarGridSpec(
            num_scalar_prefetch=0,
            grid=(r // tr, hw // tc),                      # reduction axis last
            in_specs=[pl.BlockSpec((tr, tc), lambda i, j: (i, j))],
            out_specs=pl.BlockSpec((tr, 1), lambda i, j: (i, 0)),
        ),
        compiler_params=pltpu.CompilerParams(
            dimension_semantics=("parallel", "arbitrary"),
            vmem_limit_bytes=_VMEM_LIMIT_BYTES,
        ),
    )(x2)

    pooled = sums.reshape(b, c) * (1.0 / hw)               # (B, C) f32 mean

    # --- Pass 2: gate MLP (tiny Pallas kernel, single grid point) -----------
    gate = pl.pallas_call(
        se_gate_kernel,
        out_shape=jax.ShapeDtypeStruct((b, c), jnp.float32),
        grid_spec=pltpu.PrefetchScalarGridSpec(
            num_scalar_prefetch=0,
            grid=(1,),
            in_specs=[
                pl.BlockSpec((b, c), lambda i: (0, 0)),
                pl.BlockSpec(w1.shape, lambda i: (0, 0)),
                pl.BlockSpec(w2.shape, lambda i: (0, 0)),
            ],
            out_specs=pl.BlockSpec((b, c), lambda i: (0, 0)),
        ),
        compiler_params=pltpu.CompilerParams(
            dimension_semantics=("arbitrary",),
        ),
    )(pooled, w1, w2)

    # Gate computed in f32, cast down to x.dtype; big multiply stays in native
    # dtype (no f32 upcast of the streamed tensor — bf16-friendly on v6e/v7x).
    gate2 = gate.astype(x.dtype).reshape(r, 1)

    # --- Pass 3: broadcast-scale (Pallas, HBM-roofline stream) ---------------
    out2 = pl.pallas_call(
        scale_kernel,
        out_shape=jax.ShapeDtypeStruct((r, hw), x.dtype),
        grid_spec=pltpu.PrefetchScalarGridSpec(
            num_scalar_prefetch=0,
            grid=(r // tr, hw // tc),
            in_specs=[
                pl.BlockSpec((tr, tc), lambda i, j: (i, j)),
                pl.BlockSpec((tr, 1), lambda i, j: (i, 0)),
            ],
            out_specs=pl.BlockSpec((tr, tc), lambda i, j: (i, j)),
        ),
        compiler_params=pltpu.CompilerParams(
            dimension_semantics=("parallel", "parallel"),   # both TCs on v7x
            vmem_limit_bytes=_VMEM_LIMIT_BYTES,
        ),
    )(x2, gate2)

    return out2.reshape(b, c, hh, ww)


se_layer = jax.jit(se_layer)


def se_layer_reference(x, w1, w2):
    """Pure-JAX reference mirroring the PyTorch SELayer forward."""
    y = jnp.mean(x, axis=(2, 3))                        # (B, C)  avg pool to 1x1
    y = jnp.maximum(y @ w1, 0.0)                        # Linear (no bias) + ReLU
    y = jax.nn.sigmoid(y @ w2)                          # Linear (no bias) + Sigmoid
    return x * y[:, :, None, None]


if __name__ == "__main__":
    # Small shapes consistent with the module: channels divisible by the
    # default reduction (16), so C=64 -> hidden=4; HW = 16*16 = 256 (lane-dense).
    B, C, H, W = 2, 64, 16, 16
    reduction = 16
    hidden = C // reduction

    key = jax.random.PRNGKey(0)
    kx, k1, k2 = jax.random.split(key, 3)

    x = jax.random.normal(kx, (B, C, H, W), dtype=jnp.float32)
    # PyTorch Linear stores (out, in); weights here are kept pre-transposed as
    # (in, out) so the forward is y @ W.
    w1 = jax.random.normal(k1, (C, hidden), dtype=jnp.float32) * 0.1
    w2 = jax.random.normal(k2, (hidden, C), dtype=jnp.float32) * 0.1

    out = jax.block_until_ready(se_layer(x, w1, w2))
    ref = jax.block_until_ready(se_layer_reference(x, w1, w2))

    assert out.shape == x.shape and out.dtype == x.dtype
    assert jnp.allclose(out, ref, atol=1e-5, rtol=1e-5), "mismatch vs reference"
    print("KERNEL_OK")
</pallas_src>

<mosaic_0001>
module attributes {stable_mosaic.version = 11 : i64} {
  func.func @pool_sum_kernel(%arg0: i32, %arg1: i32, %arg2: memref<128x256xf32, #tpu.memory_space<vmem>>, %arg3: memref<128x1xf32, #tpu.memory_space<vmem>>) attributes {dimension_semantics = [#tpu.dimension_semantics<parallel>, #tpu.dimension_semantics<arbitrary>], iteration_bounds = array<i64: 1, 1>, scalar_prefetch = 0 : i64, scratch_operands = 0 : i64, tpu.core_type = #tpu.core_type<tc>, window_params = [{transform_indices = @transform_0, window_bounds = array<i64: 128, 256>}, {transform_indices = @transform_1, window_bounds = array<i64: 128, 1>}]} {
    %c0 = arith.constant 0 : index
    %c0_0 = arith.constant 0 : index
    %0 = vector.load %arg2[%c0, %c0_0] : memref<128x256xf32, #tpu.memory_space<vmem>>, vector<128x256xf32>
    %cst = arith.constant dense<0.000000e+00> : vector<128xf32>
    %1 = vector.multi_reduction <add>, %0, %cst [1] : vector<128x256xf32> to vector<128xf32>
    %2 = vector.shape_cast %1 : vector<128xf32> to vector<128x1xf32>
    %c0_i32 = arith.constant 0 : i32
    %3 = arith.cmpi eq, %arg1, %c0_i32 : i32
    %4 = arith.extui %3 : i1 to i32
    %c0_i32_1 = arith.constant 0 : i32
    %5 = arith.cmpi ne, %4, %c0_i32_1 : i32
    scf.if %5 {
      %cst_6 = arith.constant 0.000000e+00 : f32
      %9 = vector.broadcast %cst_6 : f32 to vector<128x1xf32>
      %c0_7 = arith.constant 0 : index
      %c0_8 = arith.constant 0 : index
      %10 = vector.load %arg3[%c0_7, %c0_8] : memref<128x1xf32, #tpu.memory_space<vmem>>, vector<128x1xf32>
      tpu.vector_store %arg3[%c0_7, %c0_8], %9 {strides = array<i32>} : memref<128x1xf32, #tpu.memory_space<vmem>>, vector<128x1xf32>,
    } else {
    }
    %c0_2 = arith.constant 0 : index
    %c0_3 = arith.constant 0 : index
    %6 = vector.load %arg3[%c0_2, %c0_3] : memref<128x1xf32, #tpu.memory_space<vmem>>, vector<128x1xf32>
    %7 = arith.addf %6, %2 : vector<128x1xf32>
    %c0_4 = arith.constant 0 : index
    %c0_5 = arith.constant 0 : index
    %8 = vector.load %arg3[%c0_4, %c0_5] : memref<128x1xf32, #tpu.memory_space<vmem>>, vector<128x1xf32>
    tpu.vector_store %arg3[%c0_4, %c0_5], %7 {strides = array<i32>} : memref<128x1xf32, #tpu.memory_space<vmem>>, vector<128x1xf32>,
    return
  }
  func.func @transform_0(%arg0: i32, %arg1: i32) -> (i32, i32) {
    %c0_i32 = arith.constant 0 : i32
    return %arg0, %arg1 : i32, i32
  }
  func.func @transform_1(%arg0: i32, %arg1: i32) -> (i32, i32) {
    %c0_i32 = arith.constant 0 : i32
    %c0_i32_0 = arith.constant 0 : i32
    return %arg0, %c0_i32 : i32, i32
  }
}

module attributes {stable_mosaic.version = 11 : i64} {
  func.func @se_gate_kernel(%arg0: i32, %arg1: memref<2x64xf32, #tpu.memory_space<vmem>>, %arg2: memref<64x4xf32, #tpu.memory_space<vmem>>, %arg3: memref<4x64xf32, #tpu.memory_space<vmem>>, %arg4: memref<2x64xf32, #tpu.memory_space<vmem>>) attributes {dimension_semantics = [#tpu.dimension_semantics<arbitrary>], iteration_bounds = array<i64: 1>, scalar_prefetch = 0 : i64, scratch_operands = 0 : i64, tpu.core_type = #tpu.core_type<tc>, window_params = [{pipeline_mode = #tpu.pipeline_mode<synchronous>, transform_indices = @transform_0, window_bounds = array<i64: 2, 64>}, {pipeline_mode = #tpu.pipeline_mode<synchronous>, transform_indices = @transform_1, window_bounds = array<i64: 64, 4>}, {pipeline_mode = #tpu.pipeline_mode<synchronous>, transform_indices = @transform_2, window_bounds = array<i64: 4, 64>}, {pipeline_mode = #tpu.pipeline_mode<synchronous>, transform_indices = @transform_3, window_bounds = array<i64: 2, 64>}]} {
    %c0 = arith.constant 0 : index
    %c0_0 = arith.constant 0 : index
    %0 = vector.load %arg1[%c0, %c0_0] : memref<2x64xf32, #tpu.memory_space<vmem>>, vector<2x64xf32>
    %c0_1 = arith.constant 0 : index
    %c0_2 = arith.constant 0 : index
    %1 = vector.load %arg2[%c0_1, %c0_2] : memref<64x4xf32, #tpu.memory_space<vmem>>, vector<64x4xf32>
    %cst = arith.constant dense<0.000000e+00> : vector<2x4xf32>
    %2 = tpu.matmul %0, %1, %cst {dimension_numbers = #tpu.dot_dimension_numbers<[1], [0], [0], [1], [0, 0, 1, 1], [], []>} : vector<2x64xf32>, vector<64x4xf32>, vector<2x4xf32> -> vector<2x4xf32>
    %cst_3 = arith.constant 0.000000e+00 : f32
    %3 = vector.broadcast %cst_3 : f32 to vector<2x4xf32>
    %4 = arith.maximumf %2, %3 : vector<2x4xf32>
    %c0_4 = arith.constant 0 : index
    %c0_5 = arith.constant 0 : index
    %5 = vector.load %arg3[%c0_4, %c0_5] : memref<4x64xf32, #tpu.memory_space<vmem>>, vector<4x64xf32>
    %cst_6 = arith.constant dense<0.000000e+00> : vector<2x64xf32>
    %6 = tpu.matmul %4, %5, %cst_6 {dimension_numbers = #tpu.dot_dimension_numbers<[1], [0], [0], [1], [0, 0, 1, 1], [], []>} : vector<2x4xf32>, vector<4x64xf32>, vector<2x64xf32> -> vector<2x64xf32>
    %7 = arith.negf %6 : vector<2x64xf32>
    %8 = math.exp %7 : vector<2x64xf32>
    %cst_7 = arith.constant 1.000000e+00 : f32
    %9 = vector.broadcast %cst_7 : f32 to vector<2x64xf32>
    %10 = arith.addf %9, %8 : vector<2x64xf32>
    %11 = arith.divf %9, %10 : vector<2x64xf32>
    %c0_8 = arith.constant 0 : index
    %c0_9 = arith.constant 0 : index
    %12 = vector.load %arg4[%c0_8, %c0_9] : memref<2x64xf32, #tpu.memory_space<vmem>>, vector<2x64xf32>
    tpu.vector_store %arg4[%c0_8, %c0_9], %11 {strides = array<i32>} : memref<2x64xf32, #tpu.memory_space<vmem>>, vector<2x64xf32>,
    return
  }
  func.func @transform_0(%arg0: i32) -> (i32, i32) {
    %c0_i32 = arith.constant 0 : i32
    %c0_i32_0 = arith.constant 0 : i32
    %c0_i32_1 = arith.constant 0 : i32
    return %c0_i32, %c0_i32_0 : i32, i32
  }
  func.func @transform_1(%arg0: i32) -> (i32, i32) {
    %c0_i32 = arith.constant 0 : i32
    %c0_i32_0 = arith.constant 0 : i32
    %c0_i32_1 = arith.constant 0 : i32
    return %c0_i32, %c0_i32_0 : i32, i32
  }
  func.func @transform_2(%arg0: i32) -> (i32, i32) {
    %c0_i32 = arith.constant 0 : i32
    %c0_i32_0 = arith.constant 0 : i32
    %c0_i32_1 = arith.constant 0 : i32
    return %c0_i32, %c0_i32_0 : i32, i32
  }
  func.func @transform_3(%arg0: i32) -> (i32, i32) {
    %c0_i32 = arith.constant 0 : i32
    %c0_i32_0 = arith.constant 0 : i32
    %c0_i32_1 = arith.constant 0 : i32
    return %c0_i32, %c0_i32_0 : i32, i32
  }
}

module attributes {stable_mosaic.version = 11 : i64} {
  func.func @scale_kernel(%arg0: i32, %arg1: i32, %arg2: memref<128x256xf32, #tpu.memory_space<vmem>>, %arg3: memref<128x1xf32, #tpu.memory_space<vmem>>, %arg4: memref<128x256xf32, #tpu.memory_space<vmem>>) attributes {dimension_semantics = [#tpu.dimension_semantics<parallel>, #tpu.dimension_semantics<parallel>], iteration_bounds = array<i64: 1, 1>, scalar_prefetch = 0 : i64, scratch_operands = 0 : i64, tpu.core_type = #tpu.core_type<tc>, window_params = [{transform_indices = @transform_0, window_bounds = array<i64: 128, 256>}, {transform_indices = @transform_1, window_bounds = array<i64: 128, 1>}, {transform_indices = @transform_2, window_bounds = array<i64: 128, 256>}]} {
    %c0 = arith.constant 0 : index
    %c0_0 = arith.constant 0 : index
    %0 = vector.load %arg2[%c0, %c0_0] : memref<128x256xf32, #tpu.memory_space<vmem>>, vector<128x256xf32>
    %c0_1 = arith.constant 0 : index
    %c0_2 = arith.constant 0 : index
    %1 = vector.load %arg3[%c0_1, %c0_2] : memref<128x1xf32, #tpu.memory_space<vmem>>, vector<128x1xf32>
    %2 = vector.broadcast %1 : vector<128x1xf32> to vector<128x256xf32>
    %3 = arith.mulf %0, %2 : vector<128x256xf32>
    %c0_3 = arith.constant 0 : index
    %c0_4 = arith.constant 0 : index
    %4 = vector.load %arg4[%c0_3, %c0_4] : memref<128x256xf32, #tpu.memory_space<vmem>>, vector<128x256xf32>
    tpu.vector_store %arg4[%c0_3, %c0_4], %3 {strides = array<i32>} : memref<128x256xf32, #tpu.memory_space<vmem>>, vector<128x256xf32>,
    return
  }
  func.func @transform_0(%arg0: i32, %arg1: i32) -> (i32, i32) {
    %c0_i32 = arith.constant 0 : i32
    return %arg0, %arg1 : i32, i32
  }
  func.func @transform_1(%arg0: i32, %arg1: i32) -> (i32, i32) {
    %c0_i32 = arith.constant 0 : i32
    %c0_i32_0 = arith.constant 0 : i32
    return %arg0, %c0_i32 : i32, i32
  }
  func.func @transform_2(%arg0: i32, %arg1: i32) -> (i32, i32) {
    %c0_i32 = arith.constant 0 : i32
    return %arg0, %arg1 : i32, i32
  }
}

</mosaic_0001>

<bundles_post_ra>
// kernel: se_layer.3
= control target key start
LH: loop header
LB: loop body
LE: loop exit
PB: predicated region body
PF: predicated region fallthrough
CT: control target
= control target key end

     0   :  { %vm92_vm0 = vcmask 7168   ;;  %v163_v3 = vmov 0.0   ;;  %s446_s0 = inlined_call_operand.vmem [shape: f32[128,256], index: 0, kind: input, shape index: {}]   ;;  %s447_s1 = inlined_call_operand.vmem [shape: f32[128,1], index: 1, kind: output, shape index: {}]  }
   0x1   :  { %v12_v0 = vld [vmem:[%s446_s0 + $0x20] sm:$0xff]  ;;  %v13_v1 = vld [vmem:[%s446_s0 + $0x28] sm:$0xff]  ;;  %95 = vst.msk [vmem:[%s447_s1 + $0x10] sm:$0xff] %vm92_vm0, %v163_v3  ;;  %93 = vst.msk [vmem:[%s447_s1] sm:$0xff] %vm92_vm0, %v163_v3 }
   0x2   :  { %v8_v2 = vld [vmem:[%s446_s0] sm:$0xff]  ;;  %94 = vst.msk [vmem:[%s447_s1 + $0x8] sm:$0xff] %vm92_vm0, %v163_v3  ;;  %96 = vst.msk [vmem:[%s447_s1 + $0x18] sm:$0xff] %vm92_vm0, %v163_v3  ;;  %v46_v4 = vadd.f32 %v13_v1, %v12_v0  ;;  %v9_v5 = vld [vmem:[%s446_s0 + $0x8] sm:$0xff] }
   0x3   :  { %97 = vst.msk [vmem:[%s447_s1 + $0x20] sm:$0xff] %vm92_vm0, %v163_v3  ;;  %98 = vst.msk [vmem:[%s447_s1 + $0x28] sm:$0xff] %vm92_vm0, %v163_v3  ;;  %v14_v6 = vld [vmem:[%s446_s0 + $0x30] sm:$0xff]  ;;  %v15_v7 = vld [vmem:[%s446_s0 + $0x38] sm:$0xff]  ;;  %v40_v8 = vadd.f32 %v9_v5, %v8_v2 }
   0x4   :  { %99 = vst.msk [vmem:[%s447_s1 + $0x30] sm:$0xff] %vm92_vm0, %v163_v3  ;;  %100 = vst.msk [vmem:[%s447_s1 + $0x38] sm:$0xff] %vm92_vm0, %v163_v3  ;;  %v10_v9 = vld [vmem:[%s446_s0 + $0x10] sm:$0xff]  ;;  %v11_v10 = vld [vmem:[%s446_s0 + $0x18] sm:$0xff]  ;;  %47 = vadd.xlane.f32.xlu1 %v46_v4  ;;  %v49_v11 = vadd.f32 %v15_v7, %v14_v6 }
   0x5   :  { %101 = vst.msk [vmem:[%s447_s1 + $0x40] sm:$0xff] %vm92_vm0, %v163_v3  ;;  %102 = vst.msk [vmem:[%s447_s1 + $0x48] sm:$0xff] %vm92_vm0, %v163_v3  ;;  %41 = vadd.xlane.f32.xlu0 %v40_v8  ;;  %v43_v12 = vadd.f32 %v11_v10, %v10_v9  ;;  %v18_v13 = vld [vmem:[%s446_s0 + $0x50] sm:$0xff]  ;;  %v19_v14 = vld [vmem:[%s446_s0 + $0x58] sm:$0xff] }
   0x6   :  { %103 = vst.msk [vmem:[%s447_s1 + $0x50] sm:$0xff] %vm92_vm0, %v163_v3  ;;  %104 = vst.msk [vmem:[%s447_s1 + $0x58] sm:$0xff] %vm92_vm0, %v163_v3  ;;  %v16_v15 = vld [vmem:[%s446_s0 + $0x40] sm:$0xff]  ;;  %v17_v16 = vld [vmem:[%s446_s0 + $0x48] sm:$0xff]  ;;  %v55_v17 = vadd.f32 %v19_v14, %v18_v13 }
   0x7   :  { %105 = vst.msk [vmem:[%s447_s1 + $0x60] sm:$0xff] %vm92_vm0, %v163_v3  ;;  %106 = vst.msk [vmem:[%s447_s1 + $0x68] sm:$0xff] %vm92_vm0, %v163_v3  ;;  %v52_v18 = vadd.f32 %v17_v16, %v16_v15  ;;  %v22_v19 = vld [vmem:[%s446_s0 + $0x70] sm:$0xff]  ;;  %v23_v20 = vld [vmem:[%s446_s0 + $0x78] sm:$0xff] }
   0x8   :  { %107 = vst.msk [vmem:[%s447_s1 + $0x70] sm:$0xff] %vm92_vm0, %v163_v3  ;;  %108 = vst.msk [vmem:[%s447_s1 + $0x78] sm:$0xff] %vm92_vm0, %v163_v3  ;;  %50 = vadd.xlane.f32.xlu1 %v49_v11  ;;  %v20_v21 = vld [vmem:[%s446_s0 + $0x60] sm:$0xff]  ;;  %v21_v22 = vld [vmem:[%s446_s0 + $0x68] sm:$0xff]  ;;  %v61_v23 = vadd.f32 %v23_v20, %v22_v19 }
   0x9   :  { %44 = vadd.xlane.f32.xlu0 %v43_v12  ;;  %v58_v24 = vadd.f32 %v21_v22, %v20_v21  ;;  %v26_v25 = vld [vmem:[%s446_s0 + $0x90] sm:$0xff]  ;;  %v27_v26 = vld [vmem:[%s446_s0 + $0x98] sm:$0xff]  ;;  %v24_v27 = vld [vmem:[%s446_s0 + $0x80] sm:$0xff] }
   0xa   :  { %v25_v28 = vld [vmem:[%s446_s0 + $0x88] sm:$0xff]  ;;  %v67_v29 = vadd.f32 %v27_v26, %v26_v25  ;;  %v30_v31 = vld [vmem:[%s446_s0 + $0xb0] sm:$0xff]  ;;  %v31_v32 = vld [vmem:[%s446_s0 + $0xb8] sm:$0xff] }
   0xb   :  { %v64_v30 = vadd.f32 %v25_v28, %v24_v27  ;;  %v28_v33 = vld [vmem:[%s446_s0 + $0xa0] sm:$0xff]  ;;  %v29_v34 = vld [vmem:[%s446_s0 + $0xa8] sm:$0xff]  ;;  %v73_v35 = vadd.f32 %v31_v32, %v30_v31  ;;  %v34_v37 = vld [vmem:[%s446_s0 + $0xd0] sm:$0xff] }
   0xc   :  { %56 = vadd.xlane.f32.xlu1 %v55_v17  ;;  %v70_v36 = vadd.f32 %v29_v34, %v28_v33  ;;  %v35_v38 = vld [vmem:[%s446_s0 + $0xd8] sm:$0xff]  ;;  %v32_v39 = vld [vmem:[%s446_s0 + $0xc0] sm:$0xff]  ;;  %v33_v40 = vld [vmem:[%s446_s0 + $0xc8] sm:$0xff] }
   0xd   :  { %53 = vadd.xlane.f32.xlu0 %v52_v18  ;;  %v79_v41 = vadd.f32 %v35_v38, %v34_v37  ;;  %v76_v42 = vadd.f32 %v33_v40, %v32_v39  ;;  %v38_v43 = vld [vmem:[%s446_s0 + $0xf0] sm:$0xff]  ;;  %v39_v44 = vld [vmem:[%s446_s0 + $0xf8] sm:$0xff]  ;;  %v36_v45 = vld [vmem:[%s446_s0 + $0xe0] sm:$0xff] }
   0xe   :  { %v37_v46 = vld [vmem:[%s446_s0 + $0xe8] sm:$0xff]  ;;  %v85_v47 = vadd.f32 %v39_v44, %v38_v43  ;;  %v111_v49 = vld [vmem:[%s447_s1 + $0x10] sm:$0xff]  ;;  %v109_v50 = vld [vmem:[%s447_s1] sm:$0xff] }
   0xf   :  { %v82_v48 = vadd.f32 %v37_v46, %v36_v45  ;;  %v112_v55 = vld [vmem:[%s447_s1 + $0x18] sm:$0xff]  ;;  %v110_v56 = vld [vmem:[%s447_s1 + $0x8] sm:$0xff]  ;;  %v113_v62 = vld [vmem:[%s447_s1 + $0x20] sm:$0xff] }
  0x10   :  { %62 = vadd.xlane.f32.xlu1 %v61_v23  ;;  %v114_v61 = vld [vmem:[%s447_s1 + $0x28] sm:$0xff]  ;;  %v116_v3 = vld [vmem:[%s447_s1 + $0x38] sm:$0xff]  ;;  %v115_v4 = vld [vmem:[%s447_s1 + $0x30] sm:$0xff] }
  0x11   :  { %59 = vadd.xlane.f32.xlu0 %v58_v24  ;;  %v118_v9 = vld [vmem:[%s447_s1 + $0x48] sm:$0xff]  ;;  %v117_v10 = vld [vmem:[%s447_s1 + $0x40] sm:$0xff]  ;;  %v120_v15 = vld [vmem:[%s447_s1 + $0x58] sm:$0xff] }
  0x12   :  { %v119_v16 = vld [vmem:[%s447_s1 + $0x50] sm:$0xff]  ;;  %v122_v21 = vld [vmem:[%s447_s1 + $0x68] sm:$0xff]  ;;  %v121_v22 = vld [vmem:[%s447_s1 + $0x60] sm:$0xff] }
  0x13   :  { %v124_v27 = vld [vmem:[%s447_s1 + $0x78] sm:$0xff]  ;;  %v123_v28 = vld [vmem:[%s447_s1 + $0x70] sm:$0xff] }
  0x14   :  { %68 = vadd.xlane.f32.xlu1 %v67_v29 }
  0x15   :  { %65 = vadd.xlane.f32.xlu0 %v64_v30 }
  0x18   :  { %74 = vadd.xlane.f32.xlu1 %v73_v35 }
  0x19   :  { %71 = vadd.xlane.f32.xlu0 %v70_v36 }
  0x1c   :  { %80 = vadd.xlane.f32.xlu1 %v79_v41 }
  0x1d   :  { %77 = vadd.xlane.f32.xlu0 %v76_v42 }
  0x20   :  { %86 = vadd.xlane.f32.xlu1 %v85_v47 }
  0x21   :  { %83 = vadd.xlane.f32.xlu0 %v82_v48 }
  0x8d   :  { %v48_v51 = vpop.xlane.xlu1 %47 }
  0x8e   :  { %v127_v52 = vadd.f32 %v111_v49, %v48_v51  ;;  %v42_v53 = vpop.xlane.xlu0 %41 }
  0x8f   :  { %v125_v54 = vadd.f32 %v109_v50, %v42_v53 }
  0x90   :  { %144 = vst.msk [vmem:[%s447_s1 + $0x10] sm:$0xff] %vm92_vm0, %v127_v52 }
  0x91   :  { %142 = vst.msk [vmem:[%s447_s1] sm:$0xff] %vm92_vm0, %v125_v54  ;;  %v51_v57 = vpop.xlane.xlu1 %50 }
  0x92   :  { %v128_v58 = vadd.f32 %v112_v55, %v51_v57  ;;  %v45_v59 = vpop.xlane.xlu0 %44 }
  0x93   :  { %v126_v60 = vadd.f32 %v110_v56, %v45_v59 }
  0x94   :  { %145 = vst.msk [vmem:[%s447_s1 + $0x18] sm:$0xff] %vm92_vm0, %v128_v58 }
  0x95   :  { %143 = vst.msk [vmem:[%s447_s1 + $0x8] sm:$0xff] %vm92_vm0, %v126_v60  ;;  %v57_v63 = vpop.xlane.xlu1 %56 }
  0x96   :  { %v130_v0 = vadd.f32 %v114_v61, %v57_v63  ;;  %v54_v1 = vpop.xlane.xlu0 %53 }
  0x97   :  { %v129_v2 = vadd.f32 %v113_v62, %v54_v1 }
  0x98   :  { %147 = vst.msk [vmem:[%s447_s1 + $0x28] sm:$0xff] %vm92_vm0, %v130_v0 }
  0x99   :  { %146 = vst.msk [vmem:[%s447_s1 + $0x20] sm:$0xff] %vm92_vm0, %v129_v2  ;;  %v63_v5 = vpop.xlane.xlu1 %62 }
  0x9a   :  { %v132_v6 = vadd.f32 %v116_v3, %v63_v5  ;;  %v60_v7 = vpop.xlane.xlu0 %59 }
  0x9b   :  { %v131_v8 = vadd.f32 %v115_v4, %v60_v7 }
  0x9c   :  { %149 = vst.msk [vmem:[%s447_s1 + $0x38] sm:$0xff] %vm92_vm0, %v132_v6 }
  0x9d   :  { %148 = vst.msk [vmem:[%s447_s1 + $0x30] sm:$0xff] %vm92_vm0, %v131_v8  ;;  %v69_v11 = vpop.xlane.xlu1 %68 }
  0x9e   :  { %v134_v12 = vadd.f32 %v118_v9, %v69_v11  ;;  %v66_v13 = vpop.xlane.xlu0 %65 }
  0x9f   :  { %v133_v14 = vadd.f32 %v117_v10, %v66_v13 }
  0xa0   :  { %151 = vst.msk [vmem:[%s447_s1 + $0x48] sm:$0xff] %vm92_vm0, %v134_v12 }
  0xa1   :  { %150 = vst.msk [vmem:[%s447_s1 + $0x40] sm:$0xff] %vm92_vm0, %v133_v14  ;;  %v75_v17 = vpop.xlane.xlu1 %74 }
  0xa2   :  { %v136_v18 = vadd.f32 %v120_v15, %v75_v17  ;;  %v72_v19 = vpop.xlane.xlu0 %71 }
  0xa3   :  { %v135_v20 = vadd.f32 %v119_v16, %v72_v19 }
  0xa4   :  { %153 = vst.msk [vmem:[%s447_s1 + $0x58] sm:$0xff] %vm92_vm0, %v136_v18 }
  0xa5   :  { %152 = vst.msk [vmem:[%s447_s1 + $0x50] sm:$0xff] %vm92_vm0, %v135_v20  ;;  %v81_v23 = vpop.xlane.xlu1 %80 }
  0xa6   :  { %v138_v24 = vadd.f32 %v122_v21, %v81_v23  ;;  %v78_v25 = vpop.xlane.xlu0 %77 }
  0xa7   :  { %v137_v26 = vadd.f32 %v121_v22, %v78_v25 }
  0xa8   :  { %155 = vst.msk [vmem:[%s447_s1 + $0x68] sm:$0xff] %vm92_vm0, %v138_v24 }
  0xa9   :  { %154 = vst.msk [vmem:[%s447_s1 + $0x60] sm:$0xff] %vm92_vm0, %v137_v26  ;;  %v87_v29 = vpop.xlane.xlu1 %86 }
  0xaa   :  { %v140_v30 = vadd.f32 %v124_v27, %v87_v29  ;;  %v84_v31 = vpop.xlane.xlu0 %83 }
  0xab   :  { %v139_v32 = vadd.f32 %v123_v28, %v84_v31 }
  0xac   :  { %157 = vst.msk [vmem:[%s447_s1 + $0x78] sm:$0xff] %vm92_vm0, %v140_v30 }
  0xad   :  { %156 = vst.msk [vmem:[%s447_s1 + $0x70] sm:$0xff] %vm92_vm0, %v139_v32 }

// kernel: se_layer.4
= control target key start
LH: loop header
LB: loop body
LE: loop exit
PB: predicated region body
PF: predicated region fallthrough
CT: control target
= control target key end

     0   :  { %v234_v0 = vmov 0.0   ;;  %vm235_vm0 = vmmov 0   ;;  %vm23_vm1 = vcmask 523264   ;;  %vm103_vm2 = vcmask 1043456   ;;  %s289_s1 = inlined_call_operand.vmem [shape: f32[64,4], index: 1, kind: input, shape index: {}]   ;;  %s290_s0 = inlined_call_operand.vmem [shape: f32[2,64], index: 0, kind: input, shape index: {}]   ;;  %s291_s2 = inlined_call_operand.vmem [shape: f32[4,64], index: 2, kind: input, shape index: {}]   ;;  %s292_s3 = inlined_call_operand.vmem [shape: f32[2,64], index: 3, kind: output, shape index: {}]  }
   0x1   :  { %204 = vmatprep.subr.mxu0 %v234_v0  ;;  %v22_v1 = vld [vmem:[%s289_s1 + $0x38] sm:$0xff]  ;;  %v21_v2 = vld [vmem:[%s289_s1 + $0x30] sm:$0xff]  ;;  %220 = vmatprep.mubr.msk.f32.mxu0 %vm235_vm0, %v234_v0  ;;  %v20_v3 = vld [vmem:[%s289_s1 + $0x28] sm:$0xff]  ;;  %vm99_vm3 = vcmask 31744   ;;  %vm183_vm4 = vcmask 517120  }
   0x2   :  { %205 = vmatpush3.msra.mxu0 %v22_v1  ;;  %223 = vmatprep.subr.mxu1 %v234_v0  ;;  %v19_v4 = vld [vmem:[%s289_s1 + $0x20] sm:$0xff]  ;;  %v18_v5 = vld [vmem:[%s289_s1 + $0x18] sm:$0xff]  ;;  %v17_v6 = vld [vmem:[%s289_s1 + $0x10] sm:$0xff] }
   0x3   :  { %206 = vmatprep.subr.mxu0 %v234_v0  ;;  %225 = vmatprep.mubr.msk.f32.mxu1 %vm235_vm0, %v234_v0  ;;  %v16_v7 = vld [vmem:[%s289_s1 + $0x8] sm:$0xff]  ;;  %v15_v8 = vld [vmem:[%s289_s1] sm:$0xff] }
   0x4   :  { %207 = vmatpush3.msra.mxu0 %v21_v2  ;;  %v14_v9 = vld [vmem:[%s290_s0] sm:$0x3] }
   0x5   :  { %208 = vmatprep.subr.mxu0 %v234_v0  ;;  %v98_v10 = vld [vmem:[%s291_s2] sm:$0xf] }
   0x6   :  { %209 = vmatpush3.msra.mxu0 %v20_v3  ;;  %224 = vmatpush3.msk.msra.mxu1 %vm103_vm2, %v98_v10 }
   0x7   :  { %210 = vmatprep.subr.mxu0 %v234_v0 }
   0x8   :  { %211 = vmatpush3.msra.mxu0 %v19_v4 }
   0x9   :  { %212 = vmatprep.subr.mxu0 %v234_v0 }
   0xa   :  { %213 = vmatpush3.msra.mxu0 %v18_v5 }
   0xb   :  { %214 = vmatprep.subr.mxu0 %v234_v0 }
   0xc   :  { %215 = vmatpush3.msra.mxu0 %v17_v6 }
   0xd   :  { %216 = vmatprep.subr.mxu0 %v234_v0 }
   0xe   :  { %217 = vmatpush3.msra.mxu0 %v16_v7 }
   0xf   :  { %218 = vmatprep.subr.mxu0 %v234_v0 }
  0x10   :  { %219 = vmatpush3.msra.mxu0 %v15_v8 }
  0x11   :  { %221 = vmatmul.mubr.msk.f32.vlgmr.msra.gmra.mxu0 %vm23_vm1, %v14_v9 }
  0xd1   :  { %v93_v11 = vpop.f32.mrf.mxu0 }
  0xd2   :  { %v97_v12 = vmax.f32 %v93_v11, 0.0 }
  0xd3   :  { %v222_v13 = vpop.f32.mrf.mxu0 }
  0xd4   :  { %226 = vmatmul.mubr.msk.f32.vlgmr.msra.gmra.mxu1 %vm99_vm3, %v97_v12 }
 0x194   :  { %v173_v14 = vpop.f32.mrf.mxu1 }
 0x195   :  { %v192_v15 = vmul.f32 -1.442695, %v173_v14 }
 0x196   :  { %v227_v16 = vpop.f32.mrf.mxu1 }
 0x197   :  { %230 = vpow2.f32 %v192_v15 }
 0x1a4   :  { %v231_v17 = vpop.eup %230 }
 0x1a5   :  { %v180_v18 = vadd.f32 1.0, %v231_v17 }
 0x1a7   :  { %232 = vrcp.f32 %v180_v18 }
 0x1b4   :  { %v233_v19 = vpop.eup %232 }
 0x1b5   :  { %184 = vst.msk [vmem:[%s292_s3] sm:$0x3] %vm183_vm4, %v233_v19 }

// kernel: se_layer.5
= control target key start
LH: loop header
LB: loop body
LE: loop exit
PB: predicated region body
PF: predicated region fallthrough
CT: control target
= control target key end

     0   :  { %v210_v0 = vmov 0   ;;  %s466_s1 = inlined_call_operand.vmem [shape: f32[128,1], index: 1, kind: input, shape index: {}]   ;;  %s467_s0 = inlined_call_operand.vmem [shape: f32[128,256], index: 0, kind: input, shape index: {}]   ;;  %s468_s2 = inlined_call_operand.vmem [shape: f32[128,256], index: 2, kind: output, shape index: {}]  }
   0x1   :  { %209 = vset.pattern.permute.xlu1 %v210_v0  ;;  %208 = vset.pattern.permute.xlu0 %v210_v0  ;;  %v45_v1 = vld [vmem:[%s466_s1 + $0x10] sm:$0xff]  ;;  %v43_v2 = vld [vmem:[%s466_s1] sm:$0xff]  ;;  %v46_v3 = vld [vmem:[%s466_s1 + $0x18] sm:$0xff] }
   0x2   :  { %71 = vperm.xlu1 %209, %v45_v1   ;;  %61 = vperm.xlu0 %208, %v43_v2   ;;  %v44_v4 = vld [vmem:[%s466_s1 + $0x8] sm:$0xff]  ;;  %v47_v6 = vld [vmem:[%s466_s1 + $0x20] sm:$0xff]  ;;  %v50_v7 = vld [vmem:[%s466_s1 + $0x38] sm:$0xff] }
   0x3   :  { %v48_v5 = vld [vmem:[%s466_s1 + $0x28] sm:$0xff]  ;;  %v49_v8 = vld [vmem:[%s466_s1 + $0x30] sm:$0xff]  ;;  %v51_v10 = vld [vmem:[%s466_s1 + $0x40] sm:$0xff] }
   0x4   :  { %v52_v9 = vld [vmem:[%s466_s1 + $0x48] sm:$0xff]  ;;  %v54_v11 = vld [vmem:[%s466_s1 + $0x58] sm:$0xff]  ;;  %v53_v12 = vld [vmem:[%s466_s1 + $0x50] sm:$0xff] }
   0x5   :  { %v56_v13 = vld [vmem:[%s466_s1 + $0x68] sm:$0xff]  ;;  %v55_v14 = vld [vmem:[%s466_s1 + $0x60] sm:$0xff]  ;;  %v58_v15 = vld [vmem:[%s466_s1 + $0x78] sm:$0xff] }
   0x6   :  { %76 = vperm.xlu1 %209, %v46_v3   ;;  %66 = vperm.xlu0 %208, %v44_v4   ;;  %v57_v16 = vld [vmem:[%s466_s1 + $0x70] sm:$0xff]  ;;  %v15_v17 = vld [vmem:[%s467_s0 + $0x20] sm:$0xff]  ;;  %v16_v18 = vld [vmem:[%s467_s0 + $0x28] sm:$0xff] }
   0x7   :  { %v11_v19 = vld [vmem:[%s467_s0] sm:$0xff]  ;;  %v12_v20 = vld [vmem:[%s467_s0 + $0x8] sm:$0xff]  ;;  %v17_v27 = vld [vmem:[%s467_s0 + $0x30] sm:$0xff] }
   0x8   :  { %v18_v28 = vld [vmem:[%s467_s0 + $0x38] sm:$0xff]  ;;  %v13_v29 = vld [vmem:[%s467_s0 + $0x10] sm:$0xff]  ;;  %v19_v39 = vld [vmem:[%s467_s0 + $0x40] sm:$0xff] }
   0x9   :  { %v14_v30 = vld [vmem:[%s467_s0 + $0x18] sm:$0xff]  ;;  %v21_v37 = vld [vmem:[%s467_s0 + $0x50] sm:$0xff]  ;;  %v20_v40 = vld [vmem:[%s467_s0 + $0x48] sm:$0xff] }
   0xa   :  { %86 = vperm.xlu1 %209, %v48_v5   ;;  %81 = vperm.xlu0 %208, %v47_v6   ;;  %v22_v38 = vld [vmem:[%s467_s0 + $0x58] sm:$0xff]  ;;  %v25_v47 = vld [vmem:[%s467_s0 + $0x70] sm:$0xff]  ;;  %v23_v49 = vld [vmem:[%s467_s0 + $0x60] sm:$0xff] }
   0xb   :  { %v26_v48 = vld [vmem:[%s467_s0 + $0x78] sm:$0xff]  ;;  %v24_v50 = vld [vmem:[%s467_s0 + $0x68] sm:$0xff]  ;;  %v29_v57 = vld [vmem:[%s467_s0 + $0x90] sm:$0xff] }
   0xc   :  { %v30_v58 = vld [vmem:[%s467_s0 + $0x98] sm:$0xff]  ;;  %v27_v59 = vld [vmem:[%s467_s0 + $0x80] sm:$0xff]  ;;  %v28_v60 = vld [vmem:[%s467_s0 + $0x88] sm:$0xff] }
   0xd   :  { %v33_v3 = vld [vmem:[%s467_s0 + $0xb0] sm:$0xff]  ;;  %v34_v4 = vld [vmem:[%s467_s0 + $0xb8] sm:$0xff]  ;;  %v31_v5 = vld [vmem:[%s467_s0 + $0xa0] sm:$0xff] }
   0xe   :  { %96 = vperm.xlu1 %209, %v50_v7   ;;  %91 = vperm.xlu0 %208, %v49_v8   ;;  %v32_v6 = vld [vmem:[%s467_s0 + $0xa8] sm:$0xff] }
  0x12   :  { %106 = vperm.xlu1 %209, %v52_v9   ;;  %101 = vperm.xlu0 %208, %v51_v10  }
  0x16   :  { %116 = vperm.xlu1 %209, %v54_v11   ;;  %111 = vperm.xlu0 %208, %v53_v12  }
  0x1a   :  { %126 = vperm.xlu1 %209, %v56_v13   ;;  %121 = vperm.xlu0 %208, %v55_v14   ;;  %v37_v13 = vld [vmem:[%s467_s0 + $0xd0] sm:$0xff]  ;;  %v38_v14 = vld [vmem:[%s467_s0 + $0xd8] sm:$0xff] }
  0x1e   :  { %136 = vperm.xlu1 %209, %v58_v15   ;;  %131 = vperm.xlu0 %208, %v57_v16   ;;  %v35_v15 = vld [vmem:[%s467_s0 + $0xc0] sm:$0xff]  ;;  %v36_v16 = vld [vmem:[%s467_s0 + $0xc8] sm:$0xff] }
  0x7d   :  { %v72_v21 = vpop.permute.xlu1 %71  ;;  %v62_v22 = vpop.permute.xlu0 %61 }
  0x7e   :  { %v143_v23 = vmul.f32 %v72_v21, %v15_v17  ;;  %v144_v24 = vmul.f32 %v72_v21, %v16_v18  ;;  %v139_v25 = vmul.f32 %v62_v22, %v11_v19  ;;  %v140_v26 = vmul.f32 %v62_v22, %v12_v20 }
  0x80   :  { %175 = vst [vmem:[%s468_s2 + $0x20] sm:$0xff] %v143_v23  ;;  %176 = vst [vmem:[%s468_s2 + $0x28] sm:$0xff] %v144_v24  ;;  %v41_v23 = vld [vmem:[%s467_s0 + $0xf0] sm:$0xff]  ;;  %v42_v24 = vld [vmem:[%s467_s0 + $0xf8] sm:$0xff] }
  0x81   :  { %171 = vst [vmem:[%s468_s2] sm:$0xff] %v139_v25  ;;  %172 = vst [vmem:[%s468_s2 + $0x8] sm:$0xff] %v140_v26  ;;  %v77_v31 = vpop.permute.xlu1 %76  ;;  %v67_v32 = vpop.permute.xlu0 %66  ;;  %v39_v25 = vld [vmem:[%s467_s0 + $0xe0] sm:$0xff]  ;;  %v40_v26 = vld [vmem:[%s467_s0 + $0xe8] sm:$0xff] }
  0x82   :  { %v145_v33 = vmul.f32 %v77_v31, %v17_v27  ;;  %v146_v34 = vmul.f32 %v77_v31, %v18_v28  ;;  %v141_v35 = vmul.f32 %v67_v32, %v13_v29  ;;  %v142_v36 = vmul.f32 %v67_v32, %v14_v30 }
  0x84   :  { %177 = vst [vmem:[%s468_s2 + $0x30] sm:$0xff] %v145_v33  ;;  %178 = vst [vmem:[%s468_s2 + $0x38] sm:$0xff] %v146_v34 }
  0x85   :  { %173 = vst [vmem:[%s468_s2 + $0x10] sm:$0xff] %v141_v35  ;;  %174 = vst [vmem:[%s468_s2 + $0x18] sm:$0xff] %v142_v36  ;;  %v87_v41 = vpop.permute.xlu1 %86  ;;  %v82_v42 = vpop.permute.xlu0 %81 }
  0x86   :  { %v149_v43 = vmul.f32 %v87_v41, %v21_v37  ;;  %v150_v44 = vmul.f32 %v87_v41, %v22_v38  ;;  %v147_v45 = vmul.f32 %v82_v42, %v19_v39  ;;  %v148_v46 = vmul.f32 %v82_v42, %v20_v40 }
  0x88   :  { %181 = vst [vmem:[%s468_s2 + $0x50] sm:$0xff] %v149_v43  ;;  %182 = vst [vmem:[%s468_s2 + $0x58] sm:$0xff] %v150_v44 }
  0x89   :  { %179 = vst [vmem:[%s468_s2 + $0x40] sm:$0xff] %v147_v45  ;;  %180 = vst [vmem:[%s468_s2 + $0x48] sm:$0xff] %v148_v46  ;;  %v97_v51 = vpop.permute.xlu1 %96  ;;  %v92_v52 = vpop.permute.xlu0 %91 }
  0x8a   :  { %v153_v53 = vmul.f32 %v97_v51, %v25_v47  ;;  %v154_v54 = vmul.f32 %v97_v51, %v26_v48  ;;  %v151_v55 = vmul.f32 %v92_v52, %v23_v49  ;;  %v152_v56 = vmul.f32 %v92_v52, %v24_v50 }
  0x8c   :  { %185 = vst [vmem:[%s468_s2 + $0x70] sm:$0xff] %v153_v53  ;;  %186 = vst [vmem:[%s468_s2 + $0x78] sm:$0xff] %v154_v54 }
  0x8d   :  { %183 = vst [vmem:[%s468_s2 + $0x60] sm:$0xff] %v151_v55  ;;  %184 = vst [vmem:[%s468_s2 + $0x68] sm:$0xff] %v152_v56  ;;  %v107_v61 = vpop.permute.xlu1 %106  ;;  %v102_v62 = vpop.permute.xlu0 %101 }
  0x8e   :  { %v157_v63 = vmul.f32 %v107_v61, %v29_v57  ;;  %v158_v0 = vmul.f32 %v107_v61, %v30_v58  ;;  %v155_v1 = vmul.f32 %v102_v62, %v27_v59  ;;  %v156_v2 = vmul.f32 %v102_v62, %v28_v60 }
  0x90   :  { %189 = vst [vmem:[%s468_s2 + $0x90] sm:$0xff] %v157_v63  ;;  %190 = vst [vmem:[%s468_s2 + $0x98] sm:$0xff] %v158_v0 }
  0x91   :  { %187 = vst [vmem:[%s468_s2 + $0x80] sm:$0xff] %v155_v1  ;;  %188 = vst [vmem:[%s468_s2 + $0x88] sm:$0xff] %v156_v2  ;;  %v117_v7 = vpop.permute.xlu1 %116  ;;  %v112_v8 = vpop.permute.xlu0 %111 }
  0x92   :  { %v161_v9 = vmul.f32 %v117_v7, %v33_v3  ;;  %v162_v10 = vmul.f32 %v117_v7, %v34_v4  ;;  %v159_v11 = vmul.f32 %v112_v8, %v31_v5  ;;  %v160_v12 = vmul.f32 %v112_v8, %v32_v6 }
  0x94   :  { %193 = vst [vmem:[%s468_s2 + $0xb0] sm:$0xff] %v161_v9  ;;  %194 = vst [vmem:[%s468_s2 + $0xb8] sm:$0xff] %v162_v10 }
  0x95   :  { %191 = vst [vmem:[%s468_s2 + $0xa0] sm:$0xff] %v159_v11  ;;  %192 = vst [vmem:[%s468_s2 + $0xa8] sm:$0xff] %v160_v12  ;;  %v127_v17 = vpop.permute.xlu1 %126  ;;  %v122_v18 = vpop.permute.xlu0 %121 }
  0x96   :  { %v165_v19 = vmul.f32 %v127_v17, %v37_v13  ;;  %v166_v20 = vmul.f32 %v127_v17, %v38_v14  ;;  %v163_v21 = vmul.f32 %v122_v18, %v35_v15  ;;  %v164_v22 = vmul.f32 %v122_v18, %v36_v16 }
  0x98   :  { %197 = vst [vmem:[%s468_s2 + $0xd0] sm:$0xff] %v165_v19  ;;  %198 = vst [vmem:[%s468_s2 + $0xd8] sm:$0xff] %v166_v20 }
  0x99   :  { %195 = vst [vmem:[%s468_s2 + $0xc0] sm:$0xff] %v163_v21  ;;  %196 = vst [vmem:[%s468_s2 + $0xc8] sm:$0xff] %v164_v22  ;;  %v137_v27 = vpop.permute.xlu1 %136  ;;  %v132_v28 = vpop.permute.xlu0 %131 }
  0x9a   :  { %v169_v29 = vmul.f32 %v137_v27, %v41_v23  ;;  %v170_v30 = vmul.f32 %v137_v27, %v42_v24  ;;  %v167_v31 = vmul.f32 %v132_v28, %v39_v25  ;;  %v168_v32 = vmul.f32 %v132_v28, %v40_v26 }
  0x9c   :  { %201 = vst [vmem:[%s468_s2 + $0xf0] sm:$0xff] %v169_v29  ;;  %202 = vst [vmem:[%s468_s2 + $0xf8] sm:$0xff] %v170_v30 }
  0x9d   :  { %199 = vst [vmem:[%s468_s2 + $0xe0] sm:$0xff] %v167_v31  ;;  %200 = vst [vmem:[%s468_s2 + $0xe8] sm:$0xff] %v168_v32 }

</bundles_post_ra>
